<compile_context>
chip_gen: v7x
topology: tpu7x:2x2x1
jax: 0.10.0
libtpu: 0.0.40
codegen_flags: <defaults>
</compile_context>

<pallas_src>
import functools

import jax
import jax.numpy as jnp
from jax import lax
from jax.experimental import pallas as pl
from jax.experimental.pallas import tpu as pltpu

LANE = 128  # vreg lane width


def _round_up(n, m):
    return ((n + m - 1) // m) * m


def rnn_kernel(x_ref, h0_ref, wx_ref, wh_ref, b_ref, outs_ref, *,
               seq_len, batch):
    """Single-invocation Elman RNN (all shapes lane-padded to 128).

    x_ref:    (S*B, Dp)  flattened inputs (time-major)
    h0_ref:   (B, Hp)    initial hidden state
    wx_ref:   (Dp, Hp)
    wh_ref:   (Hp, Hp)
    b_ref:    (1, Hp)
    outs_ref: (S*B, Hp)  flattened per-step hidden states (time-major)
    """
    # --- Prologue: input projection hoisted off the serial chain ----------
    # One lane-dense MXU matmul, written straight into the output ref which
    # doubles as the xp staging buffer (each row is overwritten by h_t below).
    outs_ref[...] = jnp.dot(x_ref[...], wx_ref[...],
                            preferred_element_type=jnp.float32)

    wh = wh_ref[...]          # keep recurrence weights resident in vregs
    b = b_ref[...]            # (1, Hp), hoisted out of the loop

    # --- Recurrence: only h @ Wh + tanh sits on the serial path -----------
    def step(t, h):
        lo = pl.multiple_of(t * batch, batch)          # batch is a multiple of 8
        xp_t = outs_ref[pl.ds(lo, batch), :]           # read back xp for step t
        # Same FP summation order as the reference: (x@Wx + h@Wh) + b.
        h_new = jnp.tanh(
            xp_t + jnp.dot(h, wh, preferred_element_type=jnp.float32) + b)
        outs_ref[pl.ds(lo, batch), :] = h_new          # lane-dense unmasked store
        return h_new

    lax.fori_loop(0, seq_len, step, h0_ref[...], unroll=min(seq_len, 8))


def rnn_forward(x, h0, Wx, Wh, b):
    """x: (S, B, D_in), h0: (B, H), Wx: (D_in, H), Wh: (H, H), b: (1, H).

    Returns (outs, h_last) with outs: (S, B, H), h_last: (B, H).
    """
    S, B, D = x.shape
    H = Wx.shape[1]
    assert B % 8 == 0, "batch must be a multiple of 8 (sublane tile)"

    Dp = _round_up(max(D, LANE), LANE)
    Hp = _round_up(max(H, LANE), LANE)

    # Zero-padding keeps padded hidden lanes exactly 0 through the recurrence
    # (0 contributions from Wx/Wh/b, tanh(0) == 0).
    x_flat = jnp.pad(x.reshape(S * B, D), ((0, 0), (0, Dp - D)))
    h0_p = jnp.pad(h0, ((0, 0), (0, Hp - H)))
    Wx_p = jnp.pad(Wx, ((0, Dp - D), (0, Hp - H)))
    Wh_p = jnp.pad(Wh, ((0, Hp - H), (0, Hp - H)))
    b_p = jnp.pad(b, ((0, 0), (0, Hp - H)))

    kernel = functools.partial(rnn_kernel, seq_len=S, batch=B)

    flops = 2 * S * B * Dp * Hp + 2 * S * B * Hp * Hp
    transcendentals = S * B * Hp
    bytes_accessed = 4 * (S * B * Dp + B * Hp + Dp * Hp + Hp * Hp + Hp
                          + S * B * Hp)

    outs_flat = pl.pallas_call(
        kernel,
        out_shape=jax.ShapeDtypeStruct((S * B, Hp), jnp.float32),
        # No grid: single invocation; every operand is a whole-array VMEM block.
        in_specs=[pl.BlockSpec(memory_space=pltpu.MemorySpace.VMEM)] * 5,
        out_specs=pl.BlockSpec(memory_space=pltpu.MemorySpace.VMEM),
        cost_estimate=pl.CostEstimate(flops=flops,
                                      transcendentals=transcendentals,
                                      bytes_accessed=bytes_accessed),
    )(x_flat, h0_p, Wx_p, Wh_p, b_p)

    outs = outs_flat.reshape(S, B, Hp)[..., :H]
    h_last = outs[-1]                 # final hidden state sliced in the wrapper
    return outs, h_last


def rnn_reference(x, h0, Wx, Wh, b):
    """Pure-JAX reference matching the PyTorch forward."""
    def step(h, x_t):
        h_new = jnp.tanh(x_t @ Wx + h @ Wh + b)
        return h_new, h_new
    h_last, outs = jax.lax.scan(step, h0, x)
    return outs, h_last


if __name__ == "__main__":
    # Small shapes consistent with the module's forward:
    # x: (seq=8, batch=8, in_dim=16), hidden=32.
    S, B, D_in, H = 8, 8, 16, 32

    key = jax.random.PRNGKey(0)
    kx, kh0, kwx, kwh, kb = jax.random.split(key, 5)

    x = jax.random.normal(kx, (S, B, D_in), dtype=jnp.float32)

    # Parameters match torch.rand (uniform [0,1)) initialization shapes.
    Wx = jax.random.uniform(kwx, (D_in, H), dtype=jnp.float32)
    Wh = jax.random.uniform(kwh, (H, H), dtype=jnp.float32)
    b = jax.random.uniform(kb, (1, H), dtype=jnp.float32)

    # PyTorch draws h0 = torch.randn(batch, hidden) inside forward; we make
    # that draw deterministic here.
    h0 = jax.random.normal(kh0, (B, H), dtype=jnp.float32)

    outs, h_last = rnn_forward(x, h0, Wx, Wh, b)
    jax.block_until_ready((outs, h_last))

    outs_ref, h_ref = rnn_reference(x, h0, Wx, Wh, b)
    assert outs.shape == (S, B, H) and h_last.shape == (B, H)
    assert jnp.allclose(outs, outs_ref, atol=1e-5, rtol=1e-5)
    assert jnp.allclose(h_last, h_ref, atol=1e-5, rtol=1e-5)

    print("KERNEL_OK")
</pallas_src>

<mosaic_0001>
module attributes {stable_mosaic.version = 11 : i64} {
  func.func @rnn_kernel(%arg0: memref<64x128xf32, #tpu.memory_space<vmem>>, %arg1: memref<8x128xf32, #tpu.memory_space<vmem>>, %arg2: memref<128x128xf32, #tpu.memory_space<vmem>>, %arg3: memref<128x128xf32, #tpu.memory_space<vmem>>, %arg4: memref<1x128xf32, #tpu.memory_space<vmem>>, %arg5: memref<64x128xf32, #tpu.memory_space<vmem>>) attributes {dimension_semantics = [], scalar_prefetch = 0 : i64, scratch_operands = 0 : i64, tpu.core_type = #tpu.core_type<tc>} {
    %c0 = arith.constant 0 : index
    %c0_0 = arith.constant 0 : index
    %0 = vector.load %arg0[%c0, %c0_0] : memref<64x128xf32, #tpu.memory_space<vmem>>, vector<64x128xf32>
    %c0_1 = arith.constant 0 : index
    %c0_2 = arith.constant 0 : index
    %1 = vector.load %arg2[%c0_1, %c0_2] : memref<128x128xf32, #tpu.memory_space<vmem>>, vector<128x128xf32>
    %cst = arith.constant dense<0.000000e+00> : vector<64x128xf32>
    %2 = tpu.matmul %0, %1, %cst {dimension_numbers = #tpu.dot_dimension_numbers<[1], [0], [0], [1], [0, 0, 1, 1], [], []>} : vector<64x128xf32>, vector<128x128xf32>, vector<64x128xf32> -> vector<64x128xf32>
    %c0_3 = arith.constant 0 : index
    %c0_4 = arith.constant 0 : index
    %3 = vector.load %arg5[%c0_3, %c0_4] : memref<64x128xf32, #tpu.memory_space<vmem>>, vector<64x128xf32>
    tpu.vector_store %arg5[%c0_3, %c0_4], %2 {strides = array<i32>} : memref<64x128xf32, #tpu.memory_space<vmem>>, vector<64x128xf32>,
    %c0_5 = arith.constant 0 : index
    %c0_6 = arith.constant 0 : index
    %4 = vector.load %arg3[%c0_5, %c0_6] : memref<128x128xf32, #tpu.memory_space<vmem>>, vector<128x128xf32>
    %c0_7 = arith.constant 0 : index
    %c0_8 = arith.constant 0 : index
    %5 = vector.load %arg4[%c0_7, %c0_8] : memref<1x128xf32, #tpu.memory_space<vmem>>, vector<1x128xf32>
    %c0_9 = arith.constant 0 : index
    %c0_10 = arith.constant 0 : index
    %6 = vector.load %arg1[%c0_9, %c0_10] : memref<8x128xf32, #tpu.memory_space<vmem>>, vector<8x128xf32>
    %c0_i32 = arith.constant 0 : i32
    %c8_i32 = arith.constant 8 : i32
    %7 = arith.muli %c0_i32, %c8_i32 : i32
    %8 = tpu.assume_multiple %7, 8 : i32
    %9 = arith.index_cast %8 : i32 to index
    %c0_11 = arith.constant 0 : index
    %10 = vector.load %arg5[%9, %c0_11] : memref<64x128xf32, #tpu.memory_space<vmem>>, vector<8x128xf32>
    %cst_12 = arith.constant dense<0.000000e+00> : vector<8x128xf32>
    %11 = tpu.matmul %6, %4, %cst_12 {dimension_numbers = #tpu.dot_dimension_numbers<[1], [0], [0], [1], [0, 0, 1, 1], [], []>} : vector<8x128xf32>, vector<128x128xf32>, vector<8x128xf32> -> vector<8x128xf32>
    %12 = arith.addf %10, %11 : vector<8x128xf32>
    %13 = vector.broadcast %5 : vector<1x128xf32> to vector<8x128xf32>
    %14 = arith.addf %12, %13 : vector<8x128xf32>
    %15 = math.tanh %14 : vector<8x128xf32>
    %16 = arith.index_cast %8 : i32 to index
    %c0_13 = arith.constant 0 : index
    %17 = vector.load %arg5[%16, %c0_13] : memref<64x128xf32, #tpu.memory_space<vmem>>, vector<8x128xf32>
    tpu.vector_store %arg5[%16, %c0_13], %15 {strides = array<i32>} : memref<64x128xf32, #tpu.memory_space<vmem>>, vector<8x128xf32>,
    %c1_i32 = arith.constant 1 : i32
    %c8_i32_14 = arith.constant 8 : i32
    %18 = arith.muli %c1_i32, %c8_i32_14 : i32
    %19 = tpu.assume_multiple %18, 8 : i32
    %20 = arith.index_cast %19 : i32 to index
    %c0_15 = arith.constant 0 : index
    %21 = vector.load %arg5[%20, %c0_15] : memref<64x128xf32, #tpu.memory_space<vmem>>, vector<8x128xf32>
    %cst_16 = arith.constant dense<0.000000e+00> : vector<8x128xf32>
    %22 = tpu.matmul %15, %4, %cst_16 {dimension_numbers = #tpu.dot_dimension_numbers<[1], [0], [0], [1], [0, 0, 1, 1], [], []>} : vector<8x128xf32>, vector<128x128xf32>, vector<8x128xf32> -> vector<8x128xf32>
    %23 = arith.addf %21, %22 : vector<8x128xf32>
    %24 = vector.broadcast %5 : vector<1x128xf32> to vector<8x128xf32>
    %25 = arith.addf %23, %24 : vector<8x128xf32>
    %26 = math.tanh %25 : vector<8x128xf32>
    %27 = arith.index_cast %19 : i32 to index
    %c0_17 = arith.constant 0 : index
    %28 = vector.load %arg5[%27, %c0_17] : memref<64x128xf32, #tpu.memory_space<vmem>>, vector<8x128xf32>
    tpu.vector_store %arg5[%27, %c0_17], %26 {strides = array<i32>} : memref<64x128xf32, #tpu.memory_space<vmem>>, vector<8x128xf32>,
    %c2_i32 = arith.constant 2 : i32
    %c8_i32_18 = arith.constant 8 : i32
    %29 = arith.muli %c2_i32, %c8_i32_18 : i32
    %30 = tpu.assume_multiple %29, 8 : i32
    %31 = arith.index_cast %30 : i32 to index
    %c0_19 = arith.constant 0 : index
    %32 = vector.load %arg5[%31, %c0_19] : memref<64x128xf32, #tpu.memory_space<vmem>>, vector<8x128xf32>
    %cst_20 = arith.constant dense<0.000000e+00> : vector<8x128xf32>
    %33 = tpu.matmul %26, %4, %cst_20 {dimension_numbers = #tpu.dot_dimension_numbers<[1], [0], [0], [1], [0, 0, 1, 1], [], []>} : vector<8x128xf32>, vector<128x128xf32>, vector<8x128xf32> -> vector<8x128xf32>
    %34 = arith.addf %32, %33 : vector<8x128xf32>
    %35 = vector.broadcast %5 : vector<1x128xf32> to vector<8x128xf32>
    %36 = arith.addf %34, %35 : vector<8x128xf32>
    %37 = math.tanh %36 : vector<8x128xf32>
    %38 = arith.index_cast %30 : i32 to index
    %c0_21 = arith.constant 0 : index
    %39 = vector.load %arg5[%38, %c0_21] : memref<64x128xf32, #tpu.memory_space<vmem>>, vector<8x128xf32>
    tpu.vector_store %arg5[%38, %c0_21], %37 {strides = array<i32>} : memref<64x128xf32, #tpu.memory_space<vmem>>, vector<8x128xf32>,
    %c3_i32 = arith.constant 3 : i32
    %c8_i32_22 = arith.constant 8 : i32
    %40 = arith.muli %c3_i32, %c8_i32_22 : i32
    %41 = tpu.assume_multiple %40, 8 : i32
    %42 = arith.index_cast %41 : i32 to index
    %c0_23 = arith.constant 0 : index
    %43 = vector.load %arg5[%42, %c0_23] : memref<64x128xf32, #tpu.memory_space<vmem>>, vector<8x128xf32>
    %cst_24 = arith.constant dense<0.000000e+00> : vector<8x128xf32>
    %44 = tpu.matmul %37, %4, %cst_24 {dimension_numbers = #tpu.dot_dimension_numbers<[1], [0], [0], [1], [0, 0, 1, 1], [], []>} : vector<8x128xf32>, vector<128x128xf32>, vector<8x128xf32> -> vector<8x128xf32>
    %45 = arith.addf %43, %44 : vector<8x128xf32>
    %46 = vector.broadcast %5 : vector<1x128xf32> to vector<8x128xf32>
    %47 = arith.addf %45, %46 : vector<8x128xf32>
    %48 = math.tanh %47 : vector<8x128xf32>
    %49 = arith.index_cast %41 : i32 to index
    %c0_25 = arith.constant 0 : index
    %50 = vector.load %arg5[%49, %c0_25] : memref<64x128xf32, #tpu.memory_space<vmem>>, vector<8x128xf32>
    tpu.vector_store %arg5[%49, %c0_25], %48 {strides = array<i32>} : memref<64x128xf32, #tpu.memory_space<vmem>>, vector<8x128xf32>,
    %c4_i32 = arith.constant 4 : i32
    %c8_i32_26 = arith.constant 8 : i32
    %51 = arith.muli %c4_i32, %c8_i32_26 : i32
    %52 = tpu.assume_multiple %51, 8 : i32
    %53 = arith.index_cast %52 : i32 to index
    %c0_27 = arith.constant 0 : index
    %54 = vector.load %arg5[%53, %c0_27] : memref<64x128xf32, #tpu.memory_space<vmem>>, vector<8x128xf32>
    %cst_28 = arith.constant dense<0.000000e+00> : vector<8x128xf32>
    %55 = tpu.matmul %48, %4, %cst_28 {dimension_numbers = #tpu.dot_dimension_numbers<[1], [0], [0], [1], [0, 0, 1, 1], [], []>} : vector<8x128xf32>, vector<128x128xf32>, vector<8x128xf32> -> vector<8x128xf32>
    %56 = arith.addf %54, %55 : vector<8x128xf32>
    %57 = vector.broadcast %5 : vector<1x128xf32> to vector<8x128xf32>
    %58 = arith.addf %56, %57 : vector<8x128xf32>
    %59 = math.tanh %58 : vector<8x128xf32>
    %60 = arith.index_cast %52 : i32 to index
    %c0_29 = arith.constant 0 : index
    %61 = vector.load %arg5[%60, %c0_29] : memref<64x128xf32, #tpu.memory_space<vmem>>, vector<8x128xf32>
    tpu.vector_store %arg5[%60, %c0_29], %59 {strides = array<i32>} : memref<64x128xf32, #tpu.memory_space<vmem>>, vector<8x128xf32>,
    %c5_i32 = arith.constant 5 : i32
    %c8_i32_30 = arith.constant 8 : i32
    %62 = arith.muli %c5_i32, %c8_i32_30 : i32
    %63 = tpu.assume_multiple %62, 8 : i32
    %64 = arith.index_cast %63 : i32 to index
    %c0_31 = arith.constant 0 : index
    %65 = vector.load %arg5[%64, %c0_31] : memref<64x128xf32, #tpu.memory_space<vmem>>, vector<8x128xf32>
    %cst_32 = arith.constant dense<0.000000e+00> : vector<8x128xf32>
    %66 = tpu.matmul %59, %4, %cst_32 {dimension_numbers = #tpu.dot_dimension_numbers<[1], [0], [0], [1], [0, 0, 1, 1], [], []>} : vector<8x128xf32>, vector<128x128xf32>, vector<8x128xf32> -> vector<8x128xf32>
    %67 = arith.addf %65, %66 : vector<8x128xf32>
    %68 = vector.broadcast %5 : vector<1x128xf32> to vector<8x128xf32>
    %69 = arith.addf %67, %68 : vector<8x128xf32>
    %70 = math.tanh %69 : vector<8x128xf32>
    %71 = arith.index_cast %63 : i32 to index
    %c0_33 = arith.constant 0 : index
    %72 = vector.load %arg5[%71, %c0_33] : memref<64x128xf32, #tpu.memory_space<vmem>>, vector<8x128xf32>
    tpu.vector_store %arg5[%71, %c0_33], %70 {strides = array<i32>} : memref<64x128xf32, #tpu.memory_space<vmem>>, vector<8x128xf32>,
    %c6_i32 = arith.constant 6 : i32
    %c8_i32_34 = arith.constant 8 : i32
    %73 = arith.muli %c6_i32, %c8_i32_34 : i32
    %74 = tpu.assume_multiple %73, 8 : i32
    %75 = arith.index_cast %74 : i32 to index
    %c0_35 = arith.constant 0 : index
    %76 = vector.load %arg5[%75, %c0_35] : memref<64x128xf32, #tpu.memory_space<vmem>>, vector<8x128xf32>
    %cst_36 = arith.constant dense<0.000000e+00> : vector<8x128xf32>
    %77 = tpu.matmul %70, %4, %cst_36 {dimension_numbers = #tpu.dot_dimension_numbers<[1], [0], [0], [1], [0, 0, 1, 1], [], []>} : vector<8x128xf32>, vector<128x128xf32>, vector<8x128xf32> -> vector<8x128xf32>
    %78 = arith.addf %76, %77 : vector<8x128xf32>
    %79 = vector.broadcast %5 : vector<1x128xf32> to vector<8x128xf32>
    %80 = arith.addf %78, %79 : vector<8x128xf32>
    %81 = math.tanh %80 : vector<8x128xf32>
    %82 = arith.index_cast %74 : i32 to index
    %c0_37 = arith.constant 0 : index
    %83 = vector.load %arg5[%82, %c0_37] : memref<64x128xf32, #tpu.memory_space<vmem>>, vector<8x128xf32>
    tpu.vector_store %arg5[%82, %c0_37], %81 {strides = array<i32>} : memref<64x128xf32, #tpu.memory_space<vmem>>, vector<8x128xf32>,
    %c7_i32 = arith.constant 7 : i32
    %c8_i32_38 = arith.constant 8 : i32
    %84 = arith.muli %c7_i32, %c8_i32_38 : i32
    %85 = tpu.assume_multiple %84, 8 : i32
    %86 = arith.index_cast %85 : i32 to index
    %c0_39 = arith.constant 0 : index
    %87 = vector.load %arg5[%86, %c0_39] : memref<64x128xf32, #tpu.memory_space<vmem>>, vector<8x128xf32>
    %cst_40 = arith.constant dense<0.000000e+00> : vector<8x128xf32>
    %88 = tpu.matmul %81, %4, %cst_40 {dimension_numbers = #tpu.dot_dimension_numbers<[1], [0], [0], [1], [0, 0, 1, 1], [], []>} : vector<8x128xf32>, vector<128x128xf32>, vector<8x128xf32> -> vector<8x128xf32>
    %89 = arith.addf %87, %88 : vector<8x128xf32>
    %90 = vector.broadcast %5 : vector<1x128xf32> to vector<8x128xf32>
    %91 = arith.addf %89, %90 : vector<8x128xf32>
    %92 = math.tanh %91 : vector<8x128xf32>
    %93 = arith.index_cast %85 : i32 to index
    %c0_41 = arith.constant 0 : index
    %94 = vector.load %arg5[%93, %c0_41] : memref<64x128xf32, #tpu.memory_space<vmem>>, vector<8x128xf32>
    tpu.vector_store %arg5[%93, %c0_41], %92 {strides = array<i32>} : memref<64x128xf32, #tpu.memory_space<vmem>>, vector<8x128xf32>,
    %c8_i32_42 = arith.constant 8 : i32
    return
  }
}

</mosaic_0001>

<bundles_post_ra>
// kernel: tpu_custom_call.1
= control target key start
LH: loop header
LB: loop body
LE: loop exit
PB: predicated region body
PF: predicated region fallthrough
CT: control target
= control target key end

     0   :  { %10 = vsyncpa [#allocation3], 0  ;;  %s2025_s0 = inlined_call_operand.hbm [shape: f32[64,128], index: 0, kind: input, shape index: {}]   ;;  %s2026_s1 = inlined_call_operand.hbm [shape: f32[8,128], index: 1, kind: input, shape index: {}]   ;;  %s2027_s2 = inlined_call_operand.hbm [shape: f32[128,128], index: 2, kind: input, shape index: {}]   ;;  %s2028_s3 = inlined_call_operand.hbm [shape: f32[128,128], index: 3, kind: input, shape index: {}]   ;;  %s2029_s4 = inlined_call_operand.vmem [shape: f32[1,128], index: 4, kind: input, shape index: {}]   ;;  %s2030_s5 = inlined_call_operand.hbm [shape: f32[64,128], index: 5, kind: output, shape index: {}]  }
   0x1   :  { %11 = vsyncpa [#allocation6], 0 }
   0x2   :  { %12 = vsyncpa [#allocation9], 0 }
   0x3   :  { %13 = vsyncpa [#allocation4], 0  ;;  %s1714_s18 = smov [#allocation5]   ;;  %s1715_s20 = smov [#allocation2]  }
   0x4   :  { %s32_s19 = sshll.u32 %s1714_s18, 4  ;;  %s19_s21 = sshll.u32 %s1715_s20, 4  ;;  %s33_s19 = int_to_ptr.vmem [resolvable:$true] %s32_s19  ;;  %s1754_s21 = int_to_ptr.vmem [resolvable:$true] %s19_s21 }
   0x5   :  { %s1596_s24 = scalar_lea.hbm %s2026_s1, 128 }
   0x6   :  { %p1597_p0 = scmp.ne.s32.totalorder %s2026_s1, %s1596_s24  ;;  %p1600_p1 = scmp.lt.u32.totalorder %s1596_s24, %s2026_s1 }
   0x8   :  { %p1602_p2 = pnand %p1600_p1, %p1597_p0 }
   0xa   :  { %1605 = shalt.err (!%p1602_p2)
}
   0xb   :  { %s1606_s29 = scalar_lea.vmem %s33_s19, 128  ;;  %p1611_p4 = scmp.lt.s32.totalorder %s33_s19, %s33_s19 }
   0xc   :  { %p1607_p3 = scmp.ne.s32.totalorder %s33_s19, %s1606_s29  ;;  %p1612_p5 = scmp.lt.s32.totalorder %s1606_s29, %s1606_s29 }
   0xe   :  { %p1613_p6 = por %p1612_p5, %p1611_p4 }
  0x10   :  { %p1614_p7 = pnand %p1613_p6, %p1607_p3 }
  0x12   :  { %1617 = shalt.err (!%p1614_p7)
}
  0x13   :  { %35 = dma.hbm_to_vmem [thread:$0]  %s2026_s1, 128, %s33_s19, [#allocation6]  }
  0x14   :  { %s1618_s9 = scalar_lea.hbm %s2025_s0, 1024 }
  0x15   :  { %p1619_p8 = scmp.ne.s32.totalorder %s2025_s0, %s1618_s9  ;;  %p1622_p9 = scmp.lt.u32.totalorder %s1618_s9, %s2025_s0 }
  0x17   :  { %p1624_p10 = pnand %p1622_p9, %p1619_p8 }
  0x19   :  { %1627 = shalt.err (!%p1624_p10)
}
  0x1a   :  { %s1628_s14 = scalar_lea.vmem %s1754_s21, 1024  ;;  %p1633_p12 = scmp.lt.s32.totalorder %s1754_s21, %s1754_s21 }
  0x1b   :  { %p1629_p11 = scmp.ne.s32.totalorder %s1754_s21, %s1628_s14  ;;  %p1634_p13 = scmp.lt.s32.totalorder %s1628_s14, %s1628_s14 }
  0x1d   :  { %p1635_p0 = por %p1634_p13, %p1633_p12 }
  0x1f   :  { %p1636_p1 = pnand %p1635_p0, %p1629_p11 }
  0x21   :  { %1639 = shalt.err (!%p1636_p1)
}
  0x22   :  { %s1716_s1 = smov 128   ;;  %s1717_s15 = smov 8  }
  0x23   :  { %25 = dma.hbm_to_vmem [thread:$0]  %s2025_s0, 1024, %s1754_s21, [#allocation3], %s1716_s1, %s1716_s1, %s1717_s15  }
  0x24   :  { %s1718_s18 = smov [#allocation7]   ;;  %s1719_s20 = smov [#allocation8]  }
  0x25   :  { %s41_s19 = sshll.u32 %s1718_s18, 4  ;;  %s53_s22 = sshll.u32 %s1719_s20, 4  ;;  %s42_s19 = int_to_ptr.vmem [resolvable:$true] %s41_s19  ;;  %s1788_s22 = int_to_ptr.vmem [resolvable:$true] %s53_s22 }
  0x26   :  { %s1640_s25 = scalar_lea.hbm %s2027_s2, 2048 }
  0x27   :  { %p1641_p2 = scmp.ne.s32.totalorder %s2027_s2, %s1640_s25  ;;  %p1644_p3 = scmp.lt.u32.totalorder %s1640_s25, %s2027_s2 }
  0x29   :  { %p1646_p4 = pnand %p1644_p3, %p1641_p2 }
  0x2b   :  { %1649 = shalt.err (!%p1646_p4)
}
  0x2c   :  { %s1650_s0 = scalar_lea.vmem %s42_s19, 2048  ;;  %p1655_p6 = scmp.lt.s32.totalorder %s42_s19, %s42_s19 }
  0x2d   :  { %p1651_p5 = scmp.ne.s32.totalorder %s42_s19, %s1650_s0  ;;  %p1656_p7 = scmp.lt.s32.totalorder %s1650_s0, %s1650_s0 }
  0x2f   :  { %p1657_p8 = por %p1656_p7, %p1655_p6 }
  0x31   :  { %p1658_p9 = pnand %p1657_p8, %p1651_p5 }
  0x33   :  { %1661 = shalt.err (!%p1658_p9)
}
  0x34   :  { %47 = dma.hbm_to_vmem [thread:$0]  %s2027_s2, 2048, %s42_s19, [#allocation6], %s1716_s1, %s1716_s1, %s1717_s15  }
  0x35   :  { %s1662_s8 = scalar_lea.hbm %s2028_s3, 2048 }
  0x36   :  { %p1663_p10 = scmp.ne.s32.totalorder %s2028_s3, %s1662_s8  ;;  %p1666_p11 = scmp.lt.u32.totalorder %s1662_s8, %s2028_s3 }
  0x38   :  { %p1668_p12 = pnand %p1666_p11, %p1663_p10 }
  0x3a   :  { %1671 = shalt.err (!%p1668_p12)
}
  0x3b   :  { %s1672_s13 = scalar_lea.vmem %s1788_s22, 2048  ;;  %p1677_p0 = scmp.lt.s32.totalorder %s1788_s22, %s1788_s22 }
  0x3c   :  { %p1673_p13 = scmp.ne.s32.totalorder %s1788_s22, %s1672_s13  ;;  %p1678_p1 = scmp.lt.s32.totalorder %s1672_s13, %s1672_s13 }
  0x3e   :  { %p1679_p2 = por %p1678_p1, %p1677_p0 }
  0x40   :  { %p1680_p3 = pnand %p1679_p2, %p1673_p13 }
  0x42   :  { %1683 = shalt.err (!%p1680_p3)
}
  0x43   :  { %59 = dma.hbm_to_vmem [thread:$0]  %s2028_s3, 2048, %s1788_s22, [#allocation9], %s1716_s1, %s1716_s1, %s1717_s15  }
  0x44   :  { %1706 = dma.done.wait [#allocation3], 1024  }
  0x45   :  { %1707 = vsyncadd [#allocation3], 4294966272 }
  0x46   :  { %1708 = dma.done.wait [#allocation6], 2176  }
  0x47   :  { %1709 = vsyncadd [#allocation6], 4294965120 }
  0x48   :  { %1710 = dma.done.wait [#allocation9], 2048  }
  0x49   :  { %1711 = vsyncadd [#allocation9], 4294965248  ;;  %v1720_v0 = vmov 0.0|0.0   ;;  %vm1721_vm0 = vmmov 0   ;;  %v1722_v1 = vmov 0.0   ;;  %v82_v2 = vld [vmem:[#allocation7] sm:$0xff] }
  0x4a   :  { %1378 = vmatprep.subr.bf16.mxu1 %v1720_v0  ;;  %1098 = vmatprep.mubr.msk.f32.mxu1 %vm1721_vm0, %v1722_v1  ;;  %v83_v3 = vld [vmem:[#allocation7 + $0x8] sm:$0xff]  ;;  %v84_v4 = vld [vmem:[#allocation7 + $0x10] sm:$0xff]  ;;  %v85_v6 = vld [vmem:[#allocation7 + $0x18] sm:$0xff] }
  0x4b   :  { %v1346_v5 = vpack.c.bf16 %v83_v3, %v82_v2  ;;  %v86_v7 = vld [vmem:[#allocation7 + $0x20] sm:$0xff]  ;;  %v1350_v8 = vpack.c.bf16 %v85_v6, %v84_v4  ;;  %v87_v9 = vld [vmem:[#allocation7 + $0x28] sm:$0xff]  ;;  %v213_v13 = vld [vmem:[#allocation8 + $0x10] sm:$0xff] }
  0x4c   :  { %v211_v10 = vld [vmem:[#allocation8] sm:$0xff]  ;;  %v212_v11 = vld [vmem:[#allocation8 + $0x8] sm:$0xff]  ;;  %v214_v14 = vld [vmem:[#allocation8 + $0x18] sm:$0xff]  ;;  %v1354_v15 = vpack.c.bf16 %v87_v9, %v86_v7 }
  0x4d   :  { %1347 = vmatprep.subr.bf16.mxu0 %v1346_v5  ;;  %v1828_v12 = vpack.c.bf16 %v212_v11, %v211_v10  ;;  %v88_v16 = vld [vmem:[#allocation7 + $0x30] sm:$0xff]  ;;  %v1831_v17 = vpack.c.bf16 %v214_v14, %v213_v13  ;;  %v89_v18 = vld [vmem:[#allocation7 + $0x38] sm:$0xff]  ;;  %v215_v19 = vld [vmem:[#allocation8 + $0x20] sm:$0xff] }
  0x4e   :  { %1349 = vmatpush3.bf16.msra.mxu0 %v1346_v5  ;;  %v216_v20 = vld [vmem:[#allocation8 + $0x28] sm:$0xff]  ;;  %v1358_v21 = vpack.c.bf16 %v89_v18, %v88_v16  ;;  %v90_v22 = vld [vmem:[#allocation7 + $0x40] sm:$0xff]  ;;  %v74_v24 = vld [vmem:[#allocation2] sm:$0xff] }
  0x4f   :  { %1351 = vmatprep.subr.bf16.mxu0 %v1350_v8  ;;  %1380 = vmatpush3.bf16.msra.mxu1 %v1828_v12  ;;  %v1835_v23 = vpack.c.bf16 %v216_v20, %v215_v19  ;;  %v91_v25 = vld [vmem:[#allocation7 + $0x48] sm:$0xff]  ;;  %v217_v26 = vld [vmem:[#allocation8 + $0x30] sm:$0xff]  ;;  %v218_v27 = vld [vmem:[#allocation8 + $0x38] sm:$0xff] }
  0x50   :  { %1381 = vmatprep.subr.bf16.mxu1 %v1720_v0  ;;  %1054 = vmatprep.mubr.f32.mxu0 %v74_v24  ;;  %v1362_v28 = vpack.c.bf16 %v91_v25, %v90_v22  ;;  %v92_v29 = vld [vmem:[#allocation7 + $0x50] sm:$0xff]  ;;  %v1839_v30 = vpack.c.bf16 %v218_v27, %v217_v26  ;;  %v93_v31 = vld [vmem:[#allocation7 + $0x58] sm:$0xff]  ;;  %v219_v32 = vld [vmem:[#allocation8 + $0x40] sm:$0xff] }
  0x51   :  { %v220_v33 = vld [vmem:[#allocation8 + $0x48] sm:$0xff]  ;;  %v1366_v34 = vpack.c.bf16 %v93_v31, %v92_v29  ;;  %v94_v35 = vld [vmem:[#allocation7 + $0x60] sm:$0xff]  ;;  %v221_v38 = vld [vmem:[#allocation8 + $0x50] sm:$0xff] }
  0x52   :  { %1353 = vmatpush3.bf16.msra.mxu0 %v1350_v8  ;;  %v1843_v36 = vpack.c.bf16 %v220_v33, %v219_v32  ;;  %v95_v37 = vld [vmem:[#allocation7 + $0x68] sm:$0xff]  ;;  %v222_v39 = vld [vmem:[#allocation8 + $0x58] sm:$0xff]  ;;  %v96_v41 = vld [vmem:[#allocation7 + $0x70] sm:$0xff] }
  0x53   :  { %1355 = vmatprep.subr.bf16.mxu0 %v1354_v15  ;;  %1383 = vmatpush3.bf16.msra.mxu1 %v1831_v17  ;;  %v1370_v40 = vpack.c.bf16 %v95_v37, %v94_v35  ;;  %v1847_v42 = vpack.c.bf16 %v222_v39, %v221_v38  ;;  %v97_v43 = vld [vmem:[#allocation7 + $0x78] sm:$0xff]  ;;  %v223_v44 = vld [vmem:[#allocation8 + $0x60] sm:$0xff]  ;;  %v224_v45 = vld [vmem:[#allocation8 + $0x68] sm:$0xff] }
  0x54   :  { %1384 = vmatprep.subr.bf16.mxu1 %v1720_v0  ;;  %v1374_v46 = vpack.c.bf16 %v97_v43, %v96_v41  ;;  %v1851_v47 = vpack.c.bf16 %v224_v45, %v223_v44  ;;  %v225_v48 = vld [vmem:[#allocation8 + $0x70] sm:$0xff]  ;;  %v226_v49 = vld [vmem:[#allocation8 + $0x78] sm:$0xff]  ;;  %v75_v51 = vld [vmem:[#allocation2 + $0x8] sm:$0xff] }
  0x55   :  { %v1855_v50 = vpack.c.bf16 %v226_v49, %v225_v48  ;;  %v228_v52 = vld [vmem:[#allocation5] sm:$0xff]  ;;  %v76_v53 = vld [vmem:[#allocation2 + $0x10] sm:$0xff]  ;;  %v77_v54 = vld [vmem:[#allocation2 + $0x18] sm:$0xff] }
  0x56   :  { %1357 = vmatpush3.bf16.msra.mxu0 %v1354_v15  ;;  %v78_v55 = vld [vmem:[#allocation2 + $0x20] sm:$0xff]  ;;  %v79_v56 = vld [vmem:[#allocation2 + $0x28] sm:$0xff]  ;;  %v80_v57 = vld [vmem:[#allocation2 + $0x30] sm:$0xff] }
  0x57   :  { %1359 = vmatprep.subr.bf16.mxu0 %v1358_v21  ;;  %1386 = vmatpush3.bf16.msra.mxu1 %v1835_v23  ;;  %v81_v58 = vld [vmem:[#allocation2 + $0x38] sm:$0xff]  ;;  %v1900_v61 = vld [vmem:[%s2029_s4] ss:$0 sm:$0xff]  ;;  %s1723_s4 = smov [#allocation10]  }
  0x58   :  { %1387 = vmatprep.subr.bf16.mxu1 %v1720_v0  ;;  %s847_s17 = sshll.u32 %s1723_s4, 4  ;;  %s848_s17 = int_to_ptr.vmem [resolvable:$true] %s847_s17 }
  0x59   :  { %s1684_s18 = scalar_lea.vmem %s848_s17, 1024  ;;  %p1689_p5 = scmp.lt.s32.totalorder %s848_s17, %s848_s17 }
  0x5a   :  { %1361 = vmatpush3.bf16.msra.mxu0 %v1358_v21  ;;  %p1685_p4 = scmp.ne.s32.totalorder %s848_s17, %s1684_s18  ;;  %p1690_p6 = scmp.lt.s32.totalorder %s1684_s18, %s1684_s18 }
  0x5b   :  { %1363 = vmatprep.subr.bf16.mxu0 %v1362_v28  ;;  %1389 = vmatpush3.bf16.msra.mxu1 %v1839_v30 }
  0x5c   :  { %1390 = vmatprep.subr.bf16.mxu1 %v1720_v0  ;;  %p1691_p7 = por %p1690_p6, %p1689_p5 }
  0x5e   :  { %1365 = vmatpush3.bf16.msra.mxu0 %v1362_v28  ;;  %p1692_p8 = pnand %p1691_p7, %p1685_p4 }
  0x5f   :  { %1367 = vmatprep.subr.bf16.mxu0 %v1366_v34  ;;  %1392 = vmatpush3.bf16.msra.mxu1 %v1843_v36 }
  0x60   :  { %1393 = vmatprep.subr.bf16.mxu1 %v1720_v0 }
  0x62   :  { %1369 = vmatpush3.bf16.msra.mxu0 %v1366_v34 }
  0x63   :  { %1371 = vmatprep.subr.bf16.mxu0 %v1370_v40  ;;  %1395 = vmatpush3.bf16.msra.mxu1 %v1847_v42 }
  0x64   :  { %1396 = vmatprep.subr.bf16.mxu1 %v1720_v0 }
  0x66   :  { %1373 = vmatpush3.bf16.msra.mxu0 %v1370_v40 }
  0x67   :  { %1375 = vmatprep.subr.bf16.mxu0 %v1374_v46  ;;  %1398 = vmatpush3.bf16.msra.mxu1 %v1851_v47 }
  0x68   :  { %1399 = vmatprep.subr.bf16.mxu1 %v1720_v0 }
  0x6a   :  { %1377 = vmatpush3.bf16.msra.mxu0 %v1374_v46 }
  0x6b   :  { %1401 = vmatpush3.bf16.msra.mxu1 %v1855_v50  ;;  %1402 = vmatprep.subr.bf16.mxu0 %v1720_v0 }
  0x6c   :  { %1426 = vmatprep.subr.bf16.mxu1 %v1720_v0 }
  0x6d   :  { %1055 = vmatmul.mubr.f32.vlgmr.msra.gmra.mrb[0].mxu0 %v75_v51 }
  0x6e   :  { %1099 = vmatmul.mubr.f32.vlgmr.msra.gmra.mrb[0].mxu1 %v228_v52  ;;  %1404 = vmatpush3.bf16.msra.mxu0 %v1828_v12 }
  0x6f   :  { %1405 = vmatprep.subr.bf16.mxu0 %v1720_v0  ;;  %1428 = vmatpush3.bf16.msra.mxu1 %v1828_v12 }
  0x70   :  { %1429 = vmatprep.subr.bf16.mxu1 %v1720_v0  ;;  %1168 = vmatprep.mubr.msk.f32.mxu1 %vm1721_vm0, %v1722_v1 }
  0x71   :  { %1057 = vmatprep.mubr.f32.mxu0 %v76_v53 }
  0x72   :  { %1407 = vmatpush3.bf16.msra.mxu0 %v1831_v17 }
  0x73   :  { %1408 = vmatprep.subr.bf16.mxu0 %v1720_v0  ;;  %1431 = vmatpush3.bf16.msra.mxu1 %v1831_v17 }
  0x74   :  { %1432 = vmatprep.subr.bf16.mxu1 %v1720_v0  ;;  %1058 = vmatmul.mubr.f32.gmra.mrb[2].mxu0 %v77_v54 }
  0x75   :  { %1060 = vmatprep.mubr.f32.mxu0 %v78_v55 }
  0x76   :  { %1410 = vmatpush3.bf16.msra.mxu0 %v1835_v23 }
  0x77   :  { %1411 = vmatprep.subr.bf16.mxu0 %v1720_v0  ;;  %1434 = vmatpush3.bf16.msra.mxu1 %v1835_v23 }
  0x78   :  { %1435 = vmatprep.subr.bf16.mxu1 %v1720_v0  ;;  %1061 = vmatmul.mubr.f32.gmra.mrb[4].mxu0 %v79_v56 }
  0x79   :  { %1063 = vmatprep.mubr.f32.mxu0 %v80_v57 }
  0x7a   :  { %1413 = vmatpush3.bf16.msra.mxu0 %v1839_v30 }
  0x7b   :  { %1414 = vmatprep.subr.bf16.mxu0 %v1720_v0  ;;  %1437 = vmatpush3.bf16.msra.mxu1 %v1839_v30 }
  0x7c   :  { %1438 = vmatprep.subr.bf16.mxu1 %v1720_v0  ;;  %1064 = vmatmul.mubr.f32.gmra.mrb[6].mxu0 %v81_v58 }
  0x7d   :  { %1133 = vmatprep.mubr.msk.f32.mxu0 %vm1721_vm0, %v1722_v1 }
  0x7e   :  { %1416 = vmatpush3.bf16.msra.mxu0 %v1843_v36 }
  0x7f   :  { %1417 = vmatprep.subr.bf16.mxu0 %v1720_v0  ;;  %1440 = vmatpush3.bf16.msra.mxu1 %v1843_v36 }
  0x80   :  { %1441 = vmatprep.subr.bf16.mxu1 %v1720_v0 }
  0x82   :  { %1419 = vmatpush3.bf16.msra.mxu0 %v1847_v42 }
  0x83   :  { %1420 = vmatprep.subr.bf16.mxu0 %v1720_v0  ;;  %1443 = vmatpush3.bf16.msra.mxu1 %v1847_v42 }
  0x84   :  { %1444 = vmatprep.subr.bf16.mxu1 %v1720_v0 }
  0x86   :  { %1422 = vmatpush3.bf16.msra.mxu0 %v1851_v47 }
  0x87   :  { %1423 = vmatprep.subr.bf16.mxu0 %v1720_v0  ;;  %1446 = vmatpush3.bf16.msra.mxu1 %v1851_v47 }
  0x88   :  { %1447 = vmatprep.subr.bf16.mxu1 %v1720_v0 }
  0x8a   :  { %1425 = vmatpush3.bf16.msra.mxu0 %v1855_v50 }
  0x8b   :  { %1449 = vmatpush3.bf16.msra.mxu1 %v1855_v50  ;;  %1450 = vmatprep.subr.bf16.mxu0 %v1720_v0 }
  0x8c   :  { %1474 = vmatprep.subr.bf16.mxu1 %v1720_v0 }
 0x140   :  { %v1056_v59 = vpop.f32.mrb[0].mxu0 }
 0x141   :  { %v164_v60 = vpop.f32.mrb[1].mxu0  ;;  %v296_v62 = vpop.f32.mrb[0].mxu1 }
 0x142   :  { %v300_v63 = vadd.f32 %v296_v62, %v164_v60  ;;  %v1100_v2 = vpop.f32.mrb[1].mxu1 }
 0x144   :  { %v307_v3 = vadd.f32 %v1900_v61, %v300_v63 }
 0x146   :  { %1580 = vtanh.f32 %v307_v3 }
 0x147   :  { %v1059_v5 = vpop.f32.mrb[2].mxu0 }
 0x148   :  { %v174_v6 = vpop.f32.mrb[3].mxu0 }
 0x14b   :  { %v1921_v7 = vpop.f32.mrb[4].mxu0 }
 0x14c   :  { %v1923_v8 = vpop.f32.mrb[5].mxu0 }
 0x14f   :  { %v1925_v9 = vpop.f32.mrb[6].mxu0 }
 0x150   :  { %v1581_v4 = vpop.eup %1580  ;;  %v1927_v10 = vpop.f32.mrb[7].mxu0 }
 0x151   :  { %309 = vst [vmem:[#allocation10] sm:$0xff] %v1581_v4  ;;  %1134 = vmatmul.mubr.f32.vlgmr.msra.gmra.mrb[8].mxu0 %v1581_v4 }
 0x152   :  { %1452 = vmatpush3.bf16.msra.mxu0 %v1828_v12  ;;  %1203 = vmatprep.mubr.msk.f32.mxu0 %vm1721_vm0, %v1722_v1 }
 0x153   :  { %1453 = vmatprep.subr.bf16.mxu0 %v1720_v0 }
 0x156   :  { %1455 = vmatpush3.bf16.msra.mxu0 %v1831_v17 }
 0x157   :  { %1456 = vmatprep.subr.bf16.mxu0 %v1720_v0 }
 0x15a   :  { %1458 = vmatpush3.bf16.msra.mxu0 %v1835_v23 }
 0x15b   :  { %1459 = vmatprep.subr.bf16.mxu0 %v1720_v0 }
 0x15e   :  { %1461 = vmatpush3.bf16.msra.mxu0 %v1839_v30 }
 0x15f   :  { %1462 = vmatprep.subr.bf16.mxu0 %v1720_v0 }
 0x162   :  { %1464 = vmatpush3.bf16.msra.mxu0 %v1843_v36 }
 0x163   :  { %1465 = vmatprep.subr.bf16.mxu0 %v1720_v0 }
 0x166   :  { %1467 = vmatpush3.bf16.msra.mxu0 %v1847_v42 }
 0x167   :  { %1468 = vmatprep.subr.bf16.mxu0 %v1720_v0 }
 0x16a   :  { %1470 = vmatpush3.bf16.msra.mxu0 %v1851_v47 }
 0x16b   :  { %1471 = vmatprep.subr.bf16.mxu0 %v1720_v0 }
 0x16e   :  { %1473 = vmatpush3.bf16.msra.mxu0 %v1855_v50 }
 0x16f   :  { %1498 = vmatprep.subr.bf16.mxu0 %v1720_v0 }
 0x224   :  { %v378_v11 = vpop.f32.mrb[8].mxu0 }
 0x225   :  { %v382_v13 = vadd.f32 %v1056_v59, %v378_v11  ;;  %v1135_v14 = vpop.f32.mrb[9].mxu0 }
 0x227   :  { %v383_v15 = vadd.f32 %v1900_v61, %v382_v13 }
 0x229   :  { %1582 = vtanh.f32 %v383_v15 }
 0x233   :  { %v1583_v16 = vpop.eup %1582 }
 0x234   :  { %385 = vst [vmem:[#allocation10 + $0x8] sm:$0xff] %v1583_v16  ;;  %1169 = vmatmul.mubr.f32.vlgmr.msra.gmra.mrb[2].mxu1 %v1583_v16 }
 0x235   :  { %1476 = vmatpush3.bf16.msra.mxu1 %v1828_v12  ;;  %1238 = vmatprep.mubr.msk.f32.mxu1 %vm1721_vm0, %v1722_v1 }
 0x236   :  { %1477 = vmatprep.subr.bf16.mxu1 %v1720_v0 }
 0x239   :  { %1479 = vmatpush3.bf16.msra.mxu1 %v1831_v17 }
 0x23a   :  { %1480 = vmatprep.subr.bf16.mxu1 %v1720_v0 }
 0x23d   :  { %1482 = vmatpush3.bf16.msra.mxu1 %v1835_v23 }
 0x23e   :  { %1483 = vmatprep.subr.bf16.mxu1 %v1720_v0 }
 0x241   :  { %1485 = vmatpush3.bf16.msra.mxu1 %v1839_v30 }
 0x242   :  { %1486 = vmatprep.subr.bf16.mxu1 %v1720_v0 }
 0x245   :  { %1488 = vmatpush3.bf16.msra.mxu1 %v1843_v36 }
 0x246   :  { %1489 = vmatprep.subr.bf16.mxu1 %v1720_v0 }
 0x249   :  { %1491 = vmatpush3.bf16.msra.mxu1 %v1847_v42 }
 0x24a   :  { %1492 = vmatprep.subr.bf16.mxu1 %v1720_v0 }
 0x24d   :  { %1494 = vmatpush3.bf16.msra.mxu1 %v1851_v47 }
 0x24e   :  { %1495 = vmatprep.subr.bf16.mxu1 %v1720_v0 }
 0x251   :  { %1497 = vmatpush3.bf16.msra.mxu1 %v1855_v50 }
 0x252   :  { %1522 = vmatprep.subr.bf16.mxu1 %v1720_v0 }
 0x307   :  { %v454_v18 = vpop.f32.mrb[2].mxu1 }
 0x308   :  { %v458_v19 = vadd.f32 %v454_v18, %v174_v6  ;;  %v1170_v20 = vpop.f32.mrb[3].mxu1 }
 0x30a   :  { %v459_v21 = vadd.f32 %v1900_v61, %v458_v19 }
 0x30c   :  { %1584 = vtanh.f32 %v459_v21 }
 0x316   :  { %v1585_v22 = vpop.eup %1584 }
 0x317   :  { %461 = vst [vmem:[#allocation10 + $0x10] sm:$0xff] %v1585_v22  ;;  %1204 = vmatmul.mubr.f32.vlgmr.msra.gmra.mrb[10].mxu0 %v1585_v22 }
 0x318   :  { %1500 = vmatpush3.bf16.msra.mxu0 %v1828_v12  ;;  %1273 = vmatprep.mubr.msk.f32.mxu0 %vm1721_vm0, %v1722_v1 }
 0x319   :  { %1501 = vmatprep.subr.bf16.mxu0 %v1720_v0 }
 0x31c   :  { %1503 = vmatpush3.bf16.msra.mxu0 %v1831_v17 }
 0x31d   :  { %1504 = vmatprep.subr.bf16.mxu0 %v1720_v0 }
 0x320   :  { %1506 = vmatpush3.bf16.msra.mxu0 %v1835_v23 }
 0x321   :  { %1507 = vmatprep.subr.bf16.mxu0 %v1720_v0 }
 0x324   :  { %1509 = vmatpush3.bf16.msra.mxu0 %v1839_v30 }
 0x325   :  { %1510 = vmatprep.subr.bf16.mxu0 %v1720_v0 }
 0x328   :  { %1512 = vmatpush3.bf16.msra.mxu0 %v1843_v36 }
 0x329   :  { %1513 = vmatprep.subr.bf16.mxu0 %v1720_v0 }
 0x32c   :  { %1515 = vmatpush3.bf16.msra.mxu0 %v1847_v42 }
 0x32d   :  { %1516 = vmatprep.subr.bf16.mxu0 %v1720_v0 }
 0x330   :  { %1518 = vmatpush3.bf16.msra.mxu0 %v1851_v47 }
 0x331   :  { %1519 = vmatprep.subr.bf16.mxu0 %v1720_v0 }
 0x334   :  { %1521 = vmatpush3.bf16.msra.mxu0 %v1855_v50 }
 0x335   :  { %1546 = vmatprep.subr.bf16.mxu0 %v1720_v0 }
 0x3ea   :  { %v530_v24 = vpop.f32.mrb[10].mxu0 }
 0x3eb   :  { %v534_v25 = vadd.f32 %v1059_v5, %v530_v24  ;;  %v1205_v26 = vpop.f32.mrb[11].mxu0 }
 0x3ed   :  { %v535_v27 = vadd.f32 %v1900_v61, %v534_v25 }
 0x3ef   :  { %1586 = vtanh.f32 %v535_v27 }
 0x3f9   :  { %v1587_v28 = vpop.eup %1586 }
 0x3fa   :  { %537 = vst [vmem:[#allocation10 + $0x18] sm:$0xff] %v1587_v28  ;;  %1239 = vmatmul.mubr.f32.vlgmr.msra.gmra.mrb[4].mxu1 %v1587_v28 }
 0x3fb   :  { %1524 = vmatpush3.bf16.msra.mxu1 %v1828_v12  ;;  %1308 = vmatprep.mubr.msk.f32.mxu1 %vm1721_vm0, %v1722_v1 }
 0x3fc   :  { %1525 = vmatprep.subr.bf16.mxu1 %v1720_v0 }
 0x3ff   :  { %1527 = vmatpush3.bf16.msra.mxu1 %v1831_v17 }
 0x400   :  { %1528 = vmatprep.subr.bf16.mxu1 %v1720_v0 }
 0x403   :  { %1530 = vmatpush3.bf16.msra.mxu1 %v1835_v23 }
 0x404   :  { %1531 = vmatprep.subr.bf16.mxu1 %v1720_v0 }
 0x407   :  { %1533 = vmatpush3.bf16.msra.mxu1 %v1839_v30 }
 0x408   :  { %1534 = vmatprep.subr.bf16.mxu1 %v1720_v0 }
 0x40b   :  { %1536 = vmatpush3.bf16.msra.mxu1 %v1843_v36 }
 0x40c   :  { %1537 = vmatprep.subr.bf16.mxu1 %v1720_v0 }
 0x40f   :  { %1539 = vmatpush3.bf16.msra.mxu1 %v1847_v42 }
 0x410   :  { %1540 = vmatprep.subr.bf16.mxu1 %v1720_v0 }
 0x413   :  { %1542 = vmatpush3.bf16.msra.mxu1 %v1851_v47 }
 0x414   :  { %1543 = vmatprep.subr.bf16.mxu1 %v1720_v0 }
 0x417   :  { %1545 = vmatpush3.bf16.msra.mxu1 %v1855_v50 }
 0x4cd   :  { %v606_v29 = vpop.f32.mrb[4].mxu1 }
 0x4ce   :  { %v610_v31 = vadd.f32 %v606_v29, %v1923_v8  ;;  %v1240_v32 = vpop.f32.mrb[5].mxu1 }
 0x4d0   :  { %v611_v33 = vadd.f32 %v1900_v61, %v610_v31 }
 0x4d2   :  { %1588 = vtanh.f32 %v611_v33 }
 0x4dc   :  { %v1589_v34 = vpop.eup %1588 }
 0x4dd   :  { %613 = vst [vmem:[#allocation10 + $0x20] sm:$0xff] %v1589_v34  ;;  %1274 = vmatmul.mubr.f32.vlgmr.msra.gmra.mrb[12].mxu0 %v1589_v34 }
 0x4de   :  { %1548 = vmatpush3.bf16.msra.mxu0 %v1828_v12  ;;  %1343 = vmatprep.mubr.msk.f32.mxu0 %vm1721_vm0, %v1722_v1 }
 0x4df   :  { %1549 = vmatprep.subr.bf16.mxu0 %v1720_v0 }
 0x4e2   :  { %1551 = vmatpush3.bf16.msra.mxu0 %v1831_v17 }
 0x4e3   :  { %1552 = vmatprep.subr.bf16.mxu0 %v1720_v0 }
 0x4e6   :  { %1554 = vmatpush3.bf16.msra.mxu0 %v1835_v23 }
 0x4e7   :  { %1555 = vmatprep.subr.bf16.mxu0 %v1720_v0 }
 0x4ea   :  { %1557 = vmatpush3.bf16.msra.mxu0 %v1839_v30 }
 0x4eb   :  { %1558 = vmatprep.subr.bf16.mxu0 %v1720_v0 }
 0x4ee   :  { %1560 = vmatpush3.bf16.msra.mxu0 %v1843_v36 }
 0x4ef   :  { %1561 = vmatprep.subr.bf16.mxu0 %v1720_v0 }
 0x4f2   :  { %1563 = vmatpush3.bf16.msra.mxu0 %v1847_v42 }
 0x4f3   :  { %1564 = vmatprep.subr.bf16.mxu0 %v1720_v0 }
 0x4f6   :  { %1566 = vmatpush3.bf16.msra.mxu0 %v1851_v47 }
 0x4f7   :  { %1567 = vmatprep.subr.bf16.mxu0 %v1720_v0 }
 0x4fa   :  { %1569 = vmatpush3.bf16.msra.mxu0 %v1855_v50 }
 0x5b0   :  { %v682_v1 = vpop.f32.mrb[12].mxu0 }
 0x5b1   :  { %v686_v12 = vadd.f32 %v1921_v7, %v682_v1  ;;  %v1275_v17 = vpop.f32.mrb[13].mxu0 }
 0x5b3   :  { %v687_v23 = vadd.f32 %v1900_v61, %v686_v12 }
 0x5b5   :  { %1590 = vtanh.f32 %v687_v23 }
 0x5bf   :  { %v1591_v30 = vpop.eup %1590 }
 0x5c0   :  { %689 = vst [vmem:[#allocation10 + $0x28] sm:$0xff] %v1591_v30  ;;  %1309 = vmatmul.mubr.f32.vlgmr.msra.gmra.mrb[6].mxu1 %v1591_v30 }
 0x693   :  { %v758_v35 = vpop.f32.mrb[6].mxu1 }
 0x694   :  { %v762_v36 = vadd.f32 %v758_v35, %v1927_v10  ;;  %v1310_v37 = vpop.f32.mrb[7].mxu1 }
 0x696   :  { %v763_v38 = vadd.f32 %v1900_v61, %v762_v36 }
 0x698   :  { %1592 = vtanh.f32 %v763_v38 }
 0x6a2   :  { %v1593_v0 = vpop.eup %1592 }
 0x6a3   :  { %765 = vst [vmem:[#allocation10 + $0x30] sm:$0xff] %v1593_v0  ;;  %1344 = vmatmul.mubr.f32.vlgmr.msra.gmra.mrb[14].mxu0 %v1593_v0 }
 0x776   :  { %v834_v39 = vpop.f32.mrb[14].mxu0 }
 0x777   :  { %v838_v40 = vadd.f32 %v1925_v9, %v834_v39  ;;  %v1345_v41 = vpop.f32.mrb[15].mxu0 }
 0x779   :  { %v839_v42 = vadd.f32 %v1900_v61, %v838_v40 }
 0x77b   :  { %1594 = vtanh.f32 %v839_v42 }
 0x785   :  { %v1595_v43 = vpop.eup %1594 }
 0x786   :  { %841 = vst [vmem:[#allocation10 + $0x38] sm:$0xff] %v1595_v43 }
 0x787   :  { %1695 = shalt.err (!%p1692_p8)
}
 0x788   :  { %s1696_s22 = scalar_lea.hbm %s2030_s5, 1024 }
 0x789   :  { %p1697_p9 = scmp.ne.s32.totalorder %s2030_s5, %s1696_s22  ;;  %p1700_p10 = scmp.lt.u32.totalorder %s1696_s22, %s2030_s5 }
 0x78b   :  { %p1702_p11 = pnand %p1700_p10, %p1697_p9 }
 0x78d   :  { %1705 = shalt.err (!%p1702_p11)
}
 0x78e   :  { %853 = dma.vmem_to_hbm [thread:$0]  %s848_s17, 1024, %s2030_s5, [#allocation4], %s1716_s1, %s1716_s1, %s1717_s15  }
 0x78f   :  { %1712 = dma.done.wait [#allocation4], 1024  }
 0x790   :  { %1713 = vsyncadd [#allocation4], 4294966272 }
 0x791   :  { %857 = vsyncpa [#allocation3], 1 }
 0x792   :  { %858 = vsyncpa [#allocation6], 1 }
 0x793   :  { %859 = vsyncpa [#allocation9], 1 }
 0x794   :  { %860 = vsyncpa [#allocation4], 1 }

</bundles_post_ra>
